<compile_context>
chip_gen: v7x
topology: tpu7x:2x2x1
jax: 0.10.0
libtpu: 0.0.40
codegen_flags: <defaults>
</compile_context>

<pallas_src>
import functools

import jax
import jax.numpy as jnp
from jax import lax
from jax.experimental import pallas as pl
from jax.experimental.pallas import tpu as pltpu


# ------------------------- Fused Pallas kernel ------------------------- #

def _cross_attn_kernel(x_ref, y_ref, wq_ref, wkv_ref, wp_ref, bp_ref,
                       o_ref, o_scratch, *, num_heads, scale):
    # x_ref : (1, N, C)    one batch element
    # y_ref : (1, Ny, Ce)
    # wq_ref: (C, C)   wkv_ref: (Ce, 2C)   wp_ref: (C, C)   bp_ref: (1, C)
    # o_ref : (1, N, C)
    # o_scratch: VMEM (N, C) fp32, per-head attention outputs (kept lane-fused)
    x = x_ref[0]                                       # (N, C)
    yv = y_ref[0]                                      # (Ny, Ce)

    C = x.shape[-1]
    D = C // num_heads

    # q / kv projections (fp32 accumulation on MXU), no bias (qkv_bias=False).
    q = jnp.dot(x, wq_ref[...], preferred_element_type=jnp.float32)      # (N, C)
    kv = jnp.dot(yv, wkv_ref[...], preferred_element_type=jnp.float32)   # (Ny, 2C)

    # Pre-scale q (N*D per head) instead of the (N, Ny) score matrix.
    q = q * scale

    # Per-head attention; heads are static channel slices of the fused lane dim.
    for h in range(num_heads):
        qh = q[:, h * D:(h + 1) * D]                   # (N, D)
        kh = kv[:, h * D:(h + 1) * D]                  # (Ny, D)
        vh = kv[:, C + h * D:C + (h + 1) * D]          # (Ny, D)

        # q_h @ k_h^T expressed as a contraction (no transpose materialized).
        s = lax.dot_general(qh, kh, (((1,), (1,)), ((), ())),
                            preferred_element_type=jnp.float32)          # (N, Ny)
        s = s - jnp.max(s, axis=-1, keepdims=True)
        p = jnp.exp(s)
        inv = pl.reciprocal(jnp.sum(p, axis=-1, keepdims=True), approx=True)
        p = p * inv

        oh = jnp.dot(p, vh, preferred_element_type=jnp.float32)          # (N, D)
        o_scratch[:, h * D:(h + 1) * D] = oh

    # Output projection (with bias) straight from the lane-fused scratch.
    out = jnp.dot(o_scratch[...], wp_ref[...],
                  preferred_element_type=jnp.float32) + bp_ref[...]      # (N, C)
    o_ref[0] = out.astype(o_ref.dtype)


def cross_attention_forward(params, x, y, num_heads):
    """Single fused pallas_call over grid=(B,)."""
    B, N, C = x.shape
    Ny, Ce = y.shape[1], y.shape[2]
    D = C // num_heads
    scale = float(D) ** (-0.5)

    kernel = functools.partial(_cross_attn_kernel, num_heads=num_heads, scale=scale)
    proj_b2 = params["proj_b"].reshape(1, C).astype(x.dtype)

    return pl.pallas_call(
        kernel,
        out_shape=jax.ShapeDtypeStruct((B, N, C), x.dtype),
        grid=(B,),
        in_specs=[
            pl.BlockSpec((1, N, C), lambda b: (b, 0, 0)),    # x (one batch)
            pl.BlockSpec((1, Ny, Ce), lambda b: (b, 0, 0)),  # y (one batch)
            pl.BlockSpec((C, C), lambda b: (0, 0)),          # Wq  (full)
            pl.BlockSpec((Ce, 2 * C), lambda b: (0, 0)),     # Wkv (full)
            pl.BlockSpec((C, C), lambda b: (0, 0)),          # Wproj (full)
            pl.BlockSpec((1, C), lambda b: (0, 0)),          # bproj
        ],
        out_specs=pl.BlockSpec((1, N, C), lambda b: (b, 0, 0)),
        scratch_shapes=[pltpu.VMEM((N, C), jnp.float32)],
        compiler_params=pltpu.CompilerParams(
            dimension_semantics=("parallel",)),              # v7x: split B over 2 TCs
    )(x, y, params["q_w_t"], params["kv_w_t"], params["proj_w_t"], proj_b2)


# ------------------------- Params / reference ------------------------- #

def init_cross_attention_params(key, encoder_dim, decoder_dim):
    """Deterministic synthetic init. Weights stored transposed: (in, out)."""
    kq, kkv, kp, kb = jax.random.split(key, 4)
    q_w_t = jax.random.normal(kq, (decoder_dim, decoder_dim), jnp.float32) * 0.02
    kv_w_t = jax.random.normal(kkv, (encoder_dim, 2 * decoder_dim), jnp.float32) * 0.02
    proj_w_t = jax.random.normal(kp, (decoder_dim, decoder_dim), jnp.float32) * 0.02
    proj_b = jax.random.normal(kb, (decoder_dim,), jnp.float32) * 0.02
    return {"q_w_t": q_w_t, "kv_w_t": kv_w_t, "proj_w_t": proj_w_t, "proj_b": proj_b}


def cross_attention_reference(params, x, y, num_heads):
    """Pure-JAX reference used only for a sanity check."""
    B, N, C = x.shape
    Ny = y.shape[1]
    H = num_heads
    D = C // H
    scale = float(D) ** (-0.5)
    q = (x @ params["q_w_t"]).reshape(B, N, H, D).transpose(0, 2, 1, 3)
    kv = (y @ params["kv_w_t"]).reshape(B, Ny, 2, H, D).transpose(2, 0, 3, 1, 4)
    k, v = kv[0], kv[1]
    attn = jax.nn.softmax(jnp.einsum("bhnd,bhmd->bhnm", q, k) * scale, axis=-1)
    o = jnp.einsum("bhnm,bhmd->bhnd", attn, v).transpose(0, 2, 1, 3).reshape(B, N, C)
    return o @ params["proj_w_t"] + params["proj_b"]


# ------------------------- Main ------------------------- #

if __name__ == "__main__":
    B, N, Ny = 2, 8, 16
    encoder_dim, decoder_dim, num_heads = 48, 32, 8

    key = jax.random.PRNGKey(0)
    kx, ky, kp = jax.random.split(key, 3)
    x = jax.random.normal(kx, (B, N, decoder_dim), jnp.float32)
    y = jax.random.normal(ky, (B, Ny, encoder_dim), jnp.float32)
    params = init_cross_attention_params(kp, encoder_dim, decoder_dim)

    out = cross_attention_forward(params, x, y, num_heads)
    out = jax.block_until_ready(out)

    ref = cross_attention_reference(params, x, y, num_heads)
    assert out.shape == (B, N, decoder_dim)
    assert jnp.allclose(out, ref, atol=1e-2, rtol=1e-2), "mismatch vs. reference"

    print("KERNEL_OK")
</pallas_src>

<mosaic_0001>
module attributes {stable_mosaic.version = 11 : i64} {
  func.func @_cross_attn_kernel(%arg0: i32, %arg1: memref<1x8x32xf32, #tpu.memory_space<vmem>>, %arg2: memref<1x16x48xf32, #tpu.memory_space<vmem>>, %arg3: memref<32x32xf32, #tpu.memory_space<vmem>>, %arg4: memref<48x64xf32, #tpu.memory_space<vmem>>, %arg5: memref<32x32xf32, #tpu.memory_space<vmem>>, %arg6: memref<1x32xf32, #tpu.memory_space<vmem>>, %arg7: memref<1x8x32xf32, #tpu.memory_space<vmem>>, %arg8: memref<8x32xf32, #tpu.memory_space<vmem>>) attributes {dimension_semantics = [#tpu.dimension_semantics<parallel>], iteration_bounds = array<i64: 2>, scalar_prefetch = 0 : i64, scratch_operands = 1 : i64, tpu.core_type = #tpu.core_type<tc>, window_params = [{transform_indices = @transform_0, window_bounds = array<i64: 1, 8, 32>}, {transform_indices = @transform_1, window_bounds = array<i64: 1, 16, 48>}, {pipeline_mode = #tpu.pipeline_mode<synchronous>, transform_indices = @transform_2, window_bounds = array<i64: 32, 32>}, {pipeline_mode = #tpu.pipeline_mode<synchronous>, transform_indices = @transform_3, window_bounds = array<i64: 48, 64>}, {pipeline_mode = #tpu.pipeline_mode<synchronous>, transform_indices = @transform_4, window_bounds = array<i64: 32, 32>}, {pipeline_mode = #tpu.pipeline_mode<synchronous>, transform_indices = @transform_5, window_bounds = array<i64: 1, 32>}, {transform_indices = @transform_6, window_bounds = array<i64: 1, 8, 32>}]} {
    %c0 = arith.constant 0 : index
    %c0_0 = arith.constant 0 : index
    %c0_1 = arith.constant 0 : index
    %0 = vector.load %arg1[%c0, %c0_0, %c0_1] : memref<1x8x32xf32, #tpu.memory_space<vmem>>, vector<1x8x32xf32>
    %1 = vector.shape_cast %0 : vector<1x8x32xf32> to vector<8x32xf32>
    %c0_2 = arith.constant 0 : index
    %c0_3 = arith.constant 0 : index
    %c0_4 = arith.constant 0 : index
    %2 = vector.load %arg2[%c0_2, %c0_3, %c0_4] : memref<1x16x48xf32, #tpu.memory_space<vmem>>, vector<1x16x48xf32>
    %3 = vector.shape_cast %2 : vector<1x16x48xf32> to vector<16x48xf32>
    %c0_5 = arith.constant 0 : index
    %c0_6 = arith.constant 0 : index
    %4 = vector.load %arg3[%c0_5, %c0_6] : memref<32x32xf32, #tpu.memory_space<vmem>>, vector<32x32xf32>
    %cst = arith.constant dense<0.000000e+00> : vector<8x32xf32>
    %5 = tpu.matmul %1, %4, %cst {dimension_numbers = #tpu.dot_dimension_numbers<[1], [0], [0], [1], [0, 0, 1, 1], [], []>} : vector<8x32xf32>, vector<32x32xf32>, vector<8x32xf32> -> vector<8x32xf32>
    %c0_7 = arith.constant 0 : index
    %c0_8 = arith.constant 0 : index
    %6 = vector.load %arg4[%c0_7, %c0_8] : memref<48x64xf32, #tpu.memory_space<vmem>>, vector<48x64xf32>
    %cst_9 = arith.constant dense<0.000000e+00> : vector<16x64xf32>
    %7 = tpu.matmul %3, %6, %cst_9 {dimension_numbers = #tpu.dot_dimension_numbers<[1], [0], [0], [1], [0, 0, 1, 1], [], []>} : vector<16x48xf32>, vector<48x64xf32>, vector<16x64xf32> -> vector<16x64xf32>
    %cst_10 = arith.constant 5.000000e-01 : f32
    %8 = vector.broadcast %cst_10 : f32 to vector<8x32xf32>
    %9 = arith.mulf %5, %8 : vector<8x32xf32>
    %10 = vector.extract_strided_slice %9 {offsets = [0, 0], sizes = [8, 4], strides = [1, 1]} : vector<8x32xf32> to vector<8x4xf32>
    %11 = vector.extract_strided_slice %7 {offsets = [0, 0], sizes = [16, 4], strides = [1, 1]} : vector<16x64xf32> to vector<16x4xf32>
    %12 = vector.extract_strided_slice %7 {offsets = [0, 32], sizes = [16, 4], strides = [1, 1]} : vector<16x64xf32> to vector<16x4xf32>
    %cst_11 = arith.constant dense<0.000000e+00> : vector<8x16xf32>
    %13 = tpu.matmul %10, %11, %cst_11 {dimension_numbers = #tpu.dot_dimension_numbers<[1], [1], [0], [0], [0, 0, 1, 0], [], []>} : vector<8x4xf32>, vector<16x4xf32>, vector<8x16xf32> -> vector<8x16xf32>
    %cst_12 = arith.constant dense<0xFF800000> : vector<8xf32>
    %14 = vector.multi_reduction <maximumf>, %13, %cst_12 [1] : vector<8x16xf32> to vector<8xf32>
    %15 = vector.shape_cast %14 : vector<8xf32> to vector<8x1xf32>
    %16 = vector.broadcast %15 : vector<8x1xf32> to vector<8x16xf32>
    %17 = arith.subf %13, %16 : vector<8x16xf32>
    %18 = math.exp %17 : vector<8x16xf32>
    %cst_13 = arith.constant dense<0.000000e+00> : vector<8xf32>
    %19 = vector.multi_reduction <add>, %18, %cst_13 [1] : vector<8x16xf32> to vector<8xf32>
    %20 = vector.shape_cast %19 : vector<8xf32> to vector<8x1xf32>
    %21 = tpu.reciprocal %20 {approx = true} : vector<8x1xf32> -> vector<8x1xf32>
    %22 = vector.broadcast %21 : vector<8x1xf32> to vector<8x16xf32>
    %23 = arith.mulf %18, %22 : vector<8x16xf32>
    %cst_14 = arith.constant dense<0.000000e+00> : vector<8x4xf32>
    %24 = tpu.matmul %23, %12, %cst_14 {dimension_numbers = #tpu.dot_dimension_numbers<[1], [0], [0], [1], [0, 0, 1, 1], [], []>} : vector<8x16xf32>, vector<16x4xf32>, vector<8x4xf32> -> vector<8x4xf32>
    %c0_15 = arith.constant 0 : index
    %c0_16 = arith.constant 0 : index
    %25 = vector.load %arg8[%c0_15, %c0_16] : memref<8x32xf32, #tpu.memory_space<vmem>>, vector<8x4xf32>
    tpu.vector_store %arg8[%c0_15, %c0_16], %24 {strides = array<i32>} : memref<8x32xf32, #tpu.memory_space<vmem>>, vector<8x4xf32>,
    %26 = vector.extract_strided_slice %9 {offsets = [0, 4], sizes = [8, 4], strides = [1, 1]} : vector<8x32xf32> to vector<8x4xf32>
    %27 = vector.extract_strided_slice %7 {offsets = [0, 4], sizes = [16, 4], strides = [1, 1]} : vector<16x64xf32> to vector<16x4xf32>
    %28 = vector.extract_strided_slice %7 {offsets = [0, 36], sizes = [16, 4], strides = [1, 1]} : vector<16x64xf32> to vector<16x4xf32>
    %cst_17 = arith.constant dense<0.000000e+00> : vector<8x16xf32>
    %29 = tpu.matmul %26, %27, %cst_17 {dimension_numbers = #tpu.dot_dimension_numbers<[1], [1], [0], [0], [0, 0, 1, 0], [], []>} : vector<8x4xf32>, vector<16x4xf32>, vector<8x16xf32> -> vector<8x16xf32>
    %cst_18 = arith.constant dense<0xFF800000> : vector<8xf32>
    %30 = vector.multi_reduction <maximumf>, %29, %cst_18 [1] : vector<8x16xf32> to vector<8xf32>
    %31 = vector.shape_cast %30 : vector<8xf32> to vector<8x1xf32>
    %32 = vector.broadcast %31 : vector<8x1xf32> to vector<8x16xf32>
    %33 = arith.subf %29, %32 : vector<8x16xf32>
    %34 = math.exp %33 : vector<8x16xf32>
    %cst_19 = arith.constant dense<0.000000e+00> : vector<8xf32>
    %35 = vector.multi_reduction <add>, %34, %cst_19 [1] : vector<8x16xf32> to vector<8xf32>
    %36 = vector.shape_cast %35 : vector<8xf32> to vector<8x1xf32>
    %37 = tpu.reciprocal %36 {approx = true} : vector<8x1xf32> -> vector<8x1xf32>
    %38 = vector.broadcast %37 : vector<8x1xf32> to vector<8x16xf32>
    %39 = arith.mulf %34, %38 : vector<8x16xf32>
    %cst_20 = arith.constant dense<0.000000e+00> : vector<8x4xf32>
    %40 = tpu.matmul %39, %28, %cst_20 {dimension_numbers = #tpu.dot_dimension_numbers<[1], [0], [0], [1], [0, 0, 1, 1], [], []>} : vector<8x16xf32>, vector<16x4xf32>, vector<8x4xf32> -> vector<8x4xf32>
    %c0_21 = arith.constant 0 : index
    %c4 = arith.constant 4 : index
    %41 = vector.load %arg8[%c0_21, %c4] : memref<8x32xf32, #tpu.memory_space<vmem>>, vector<8x4xf32>
    tpu.vector_store %arg8[%c0_21, %c4], %40 {strides = array<i32>} : memref<8x32xf32, #tpu.memory_space<vmem>>, vector<8x4xf32>,
    %42 = vector.extract_strided_slice %9 {offsets = [0, 8], sizes = [8, 4], strides = [1, 1]} : vector<8x32xf32> to vector<8x4xf32>
    %43 = vector.extract_strided_slice %7 {offsets = [0, 8], sizes = [16, 4], strides = [1, 1]} : vector<16x64xf32> to vector<16x4xf32>
    %44 = vector.extract_strided_slice %7 {offsets = [0, 40], sizes = [16, 4], strides = [1, 1]} : vector<16x64xf32> to vector<16x4xf32>
    %cst_22 = arith.constant dense<0.000000e+00> : vector<8x16xf32>
    %45 = tpu.matmul %42, %43, %cst_22 {dimension_numbers = #tpu.dot_dimension_numbers<[1], [1], [0], [0], [0, 0, 1, 0], [], []>} : vector<8x4xf32>, vector<16x4xf32>, vector<8x16xf32> -> vector<8x16xf32>
    %cst_23 = arith.constant dense<0xFF800000> : vector<8xf32>
    %46 = vector.multi_reduction <maximumf>, %45, %cst_23 [1] : vector<8x16xf32> to vector<8xf32>
    %47 = vector.shape_cast %46 : vector<8xf32> to vector<8x1xf32>
    %48 = vector.broadcast %47 : vector<8x1xf32> to vector<8x16xf32>
    %49 = arith.subf %45, %48 : vector<8x16xf32>
    %50 = math.exp %49 : vector<8x16xf32>
    %cst_24 = arith.constant dense<0.000000e+00> : vector<8xf32>
    %51 = vector.multi_reduction <add>, %50, %cst_24 [1] : vector<8x16xf32> to vector<8xf32>
    %52 = vector.shape_cast %51 : vector<8xf32> to vector<8x1xf32>
    %53 = tpu.reciprocal %52 {approx = true} : vector<8x1xf32> -> vector<8x1xf32>
    %54 = vector.broadcast %53 : vector<8x1xf32> to vector<8x16xf32>
    %55 = arith.mulf %50, %54 : vector<8x16xf32>
    %cst_25 = arith.constant dense<0.000000e+00> : vector<8x4xf32>
    %56 = tpu.matmul %55, %44, %cst_25 {dimension_numbers = #tpu.dot_dimension_numbers<[1], [0], [0], [1], [0, 0, 1, 1], [], []>} : vector<8x16xf32>, vector<16x4xf32>, vector<8x4xf32> -> vector<8x4xf32>
    %c0_26 = arith.constant 0 : index
    %c8 = arith.constant 8 : index
    %57 = vector.load %arg8[%c0_26, %c8] : memref<8x32xf32, #tpu.memory_space<vmem>>, vector<8x4xf32>
    tpu.vector_store %arg8[%c0_26, %c8], %56 {strides = array<i32>} : memref<8x32xf32, #tpu.memory_space<vmem>>, vector<8x4xf32>,
    %58 = vector.extract_strided_slice %9 {offsets = [0, 12], sizes = [8, 4], strides = [1, 1]} : vector<8x32xf32> to vector<8x4xf32>
    %59 = vector.extract_strided_slice %7 {offsets = [0, 12], sizes = [16, 4], strides = [1, 1]} : vector<16x64xf32> to vector<16x4xf32>
    %60 = vector.extract_strided_slice %7 {offsets = [0, 44], sizes = [16, 4], strides = [1, 1]} : vector<16x64xf32> to vector<16x4xf32>
    %cst_27 = arith.constant dense<0.000000e+00> : vector<8x16xf32>
    %61 = tpu.matmul %58, %59, %cst_27 {dimension_numbers = #tpu.dot_dimension_numbers<[1], [1], [0], [0], [0, 0, 1, 0], [], []>} : vector<8x4xf32>, vector<16x4xf32>, vector<8x16xf32> -> vector<8x16xf32>
    %cst_28 = arith.constant dense<0xFF800000> : vector<8xf32>
    %62 = vector.multi_reduction <maximumf>, %61, %cst_28 [1] : vector<8x16xf32> to vector<8xf32>
    %63 = vector.shape_cast %62 : vector<8xf32> to vector<8x1xf32>
    %64 = vector.broadcast %63 : vector<8x1xf32> to vector<8x16xf32>
    %65 = arith.subf %61, %64 : vector<8x16xf32>
    %66 = math.exp %65 : vector<8x16xf32>
    %cst_29 = arith.constant dense<0.000000e+00> : vector<8xf32>
    %67 = vector.multi_reduction <add>, %66, %cst_29 [1] : vector<8x16xf32> to vector<8xf32>
    %68 = vector.shape_cast %67 : vector<8xf32> to vector<8x1xf32>
    %69 = tpu.reciprocal %68 {approx = true} : vector<8x1xf32> -> vector<8x1xf32>
    %70 = vector.broadcast %69 : vector<8x1xf32> to vector<8x16xf32>
    %71 = arith.mulf %66, %70 : vector<8x16xf32>
    %cst_30 = arith.constant dense<0.000000e+00> : vector<8x4xf32>
    %72 = tpu.matmul %71, %60, %cst_30 {dimension_numbers = #tpu.dot_dimension_numbers<[1], [0], [0], [1], [0, 0, 1, 1], [], []>} : vector<8x16xf32>, vector<16x4xf32>, vector<8x4xf32> -> vector<8x4xf32>
    %c0_31 = arith.constant 0 : index
    %c12 = arith.constant 12 : index
    %73 = vector.load %arg8[%c0_31, %c12] : memref<8x32xf32, #tpu.memory_space<vmem>>, vector<8x4xf32>
    tpu.vector_store %arg8[%c0_31, %c12], %72 {strides = array<i32>} : memref<8x32xf32, #tpu.memory_space<vmem>>, vector<8x4xf32>,
    %74 = vector.extract_strided_slice %9 {offsets = [0, 16], sizes = [8, 4], strides = [1, 1]} : vector<8x32xf32> to vector<8x4xf32>
    %75 = vector.extract_strided_slice %7 {offsets = [0, 16], sizes = [16, 4], strides = [1, 1]} : vector<16x64xf32> to vector<16x4xf32>
    %76 = vector.extract_strided_slice %7 {offsets = [0, 48], sizes = [16, 4], strides = [1, 1]} : vector<16x64xf32> to vector<16x4xf32>
    %cst_32 = arith.constant dense<0.000000e+00> : vector<8x16xf32>
    %77 = tpu.matmul %74, %75, %cst_32 {dimension_numbers = #tpu.dot_dimension_numbers<[1], [1], [0], [0], [0, 0, 1, 0], [], []>} : vector<8x4xf32>, vector<16x4xf32>, vector<8x16xf32> -> vector<8x16xf32>
    %cst_33 = arith.constant dense<0xFF800000> : vector<8xf32>
    %78 = vector.multi_reduction <maximumf>, %77, %cst_33 [1] : vector<8x16xf32> to vector<8xf32>
    %79 = vector.shape_cast %78 : vector<8xf32> to vector<8x1xf32>
    %80 = vector.broadcast %79 : vector<8x1xf32> to vector<8x16xf32>
    %81 = arith.subf %77, %80 : vector<8x16xf32>
    %82 = math.exp %81 : vector<8x16xf32>
    %cst_34 = arith.constant dense<0.000000e+00> : vector<8xf32>
    %83 = vector.multi_reduction <add>, %82, %cst_34 [1] : vector<8x16xf32> to vector<8xf32>
    %84 = vector.shape_cast %83 : vector<8xf32> to vector<8x1xf32>
    %85 = tpu.reciprocal %84 {approx = true} : vector<8x1xf32> -> vector<8x1xf32>
    %86 = vector.broadcast %85 : vector<8x1xf32> to vector<8x16xf32>
    %87 = arith.mulf %82, %86 : vector<8x16xf32>
    %cst_35 = arith.constant dense<0.000000e+00> : vector<8x4xf32>
    %88 = tpu.matmul %87, %76, %cst_35 {dimension_numbers = #tpu.dot_dimension_numbers<[1], [0], [0], [1], [0, 0, 1, 1], [], []>} : vector<8x16xf32>, vector<16x4xf32>, vector<8x4xf32> -> vector<8x4xf32>
    %c0_36 = arith.constant 0 : index
    %c16 = arith.constant 16 : index
    %89 = vector.load %arg8[%c0_36, %c16] : memref<8x32xf32, #tpu.memory_space<vmem>>, vector<8x4xf32>
    tpu.vector_store %arg8[%c0_36, %c16], %88 {strides = array<i32>} : memref<8x32xf32, #tpu.memory_space<vmem>>, vector<8x4xf32>,
    %90 = vector.extract_strided_slice %9 {offsets = [0, 20], sizes = [8, 4], strides = [1, 1]} : vector<8x32xf32> to vector<8x4xf32>
    %91 = vector.extract_strided_slice %7 {offsets = [0, 20], sizes = [16, 4], strides = [1, 1]} : vector<16x64xf32> to vector<16x4xf32>
    %92 = vector.extract_strided_slice %7 {offsets = [0, 52], sizes = [16, 4], strides = [1, 1]} : vector<16x64xf32> to vector<16x4xf32>
    %cst_37 = arith.constant dense<0.000000e+00> : vector<8x16xf32>
    %93 = tpu.matmul %90, %91, %cst_37 {dimension_numbers = #tpu.dot_dimension_numbers<[1], [1], [0], [0], [0, 0, 1, 0], [], []>} : vector<8x4xf32>, vector<16x4xf32>, vector<8x16xf32> -> vector<8x16xf32>
    %cst_38 = arith.constant dense<0xFF800000> : vector<8xf32>
    %94 = vector.multi_reduction <maximumf>, %93, %cst_38 [1] : vector<8x16xf32> to vector<8xf32>
    %95 = vector.shape_cast %94 : vector<8xf32> to vector<8x1xf32>
    %96 = vector.broadcast %95 : vector<8x1xf32> to vector<8x16xf32>
    %97 = arith.subf %93, %96 : vector<8x16xf32>
    %98 = math.exp %97 : vector<8x16xf32>
    %cst_39 = arith.constant dense<0.000000e+00> : vector<8xf32>
    %99 = vector.multi_reduction <add>, %98, %cst_39 [1] : vector<8x16xf32> to vector<8xf32>
    %100 = vector.shape_cast %99 : vector<8xf32> to vector<8x1xf32>
    %101 = tpu.reciprocal %100 {approx = true} : vector<8x1xf32> -> vector<8x1xf32>
    %102 = vector.broadcast %101 : vector<8x1xf32> to vector<8x16xf32>
    %103 = arith.mulf %98, %102 : vector<8x16xf32>
    %cst_40 = arith.constant dense<0.000000e+00> : vector<8x4xf32>
    %104 = tpu.matmul %103, %92, %cst_40 {dimension_numbers = #tpu.dot_dimension_numbers<[1], [0], [0], [1], [0, 0, 1, 1], [], []>} : vector<8x16xf32>, vector<16x4xf32>, vector<8x4xf32> -> vector<8x4xf32>
    %c0_41 = arith.constant 0 : index
    %c20 = arith.constant 20 : index
    %105 = vector.load %arg8[%c0_41, %c20] : memref<8x32xf32, #tpu.memory_space<vmem>>, vector<8x4xf32>
    tpu.vector_store %arg8[%c0_41, %c20], %104 {strides = array<i32>} : memref<8x32xf32, #tpu.memory_space<vmem>>, vector<8x4xf32>,
    %106 = vector.extract_strided_slice %9 {offsets = [0, 24], sizes = [8, 4], strides = [1, 1]} : vector<8x32xf32> to vector<8x4xf32>
    %107 = vector.extract_strided_slice %7 {offsets = [0, 24], sizes = [16, 4], strides = [1, 1]} : vector<16x64xf32> to vector<16x4xf32>
    %108 = vector.extract_strided_slice %7 {offsets = [0, 56], sizes = [16, 4], strides = [1, 1]} : vector<16x64xf32> to vector<16x4xf32>
    %cst_42 = arith.constant dense<0.000000e+00> : vector<8x16xf32>
    %109 = tpu.matmul %106, %107, %cst_42 {dimension_numbers = #tpu.dot_dimension_numbers<[1], [1], [0], [0], [0, 0, 1, 0], [], []>} : vector<8x4xf32>, vector<16x4xf32>, vector<8x16xf32> -> vector<8x16xf32>
    %cst_43 = arith.constant dense<0xFF800000> : vector<8xf32>
    %110 = vector.multi_reduction <maximumf>, %109, %cst_43 [1] : vector<8x16xf32> to vector<8xf32>
    %111 = vector.shape_cast %110 : vector<8xf32> to vector<8x1xf32>
    %112 = vector.broadcast %111 : vector<8x1xf32> to vector<8x16xf32>
    %113 = arith.subf %109, %112 : vector<8x16xf32>
    %114 = math.exp %113 : vector<8x16xf32>
    %cst_44 = arith.constant dense<0.000000e+00> : vector<8xf32>
    %115 = vector.multi_reduction <add>, %114, %cst_44 [1] : vector<8x16xf32> to vector<8xf32>
    %116 = vector.shape_cast %115 : vector<8xf32> to vector<8x1xf32>
    %117 = tpu.reciprocal %116 {approx = true} : vector<8x1xf32> -> vector<8x1xf32>
    %118 = vector.broadcast %117 : vector<8x1xf32> to vector<8x16xf32>
    %119 = arith.mulf %114, %118 : vector<8x16xf32>
    %cst_45 = arith.constant dense<0.000000e+00> : vector<8x4xf32>
    %120 = tpu.matmul %119, %108, %cst_45 {dimension_numbers = #tpu.dot_dimension_numbers<[1], [0], [0], [1], [0, 0, 1, 1], [], []>} : vector<8x16xf32>, vector<16x4xf32>, vector<8x4xf32> -> vector<8x4xf32>
    %c0_46 = arith.constant 0 : index
    %c24 = arith.constant 24 : index
    %121 = vector.load %arg8[%c0_46, %c24] : memref<8x32xf32, #tpu.memory_space<vmem>>, vector<8x4xf32>
    tpu.vector_store %arg8[%c0_46, %c24], %120 {strides = array<i32>} : memref<8x32xf32, #tpu.memory_space<vmem>>, vector<8x4xf32>,
    %122 = vector.extract_strided_slice %9 {offsets = [0, 28], sizes = [8, 4], strides = [1, 1]} : vector<8x32xf32> to vector<8x4xf32>
    %123 = vector.extract_strided_slice %7 {offsets = [0, 28], sizes = [16, 4], strides = [1, 1]} : vector<16x64xf32> to vector<16x4xf32>
    %124 = vector.extract_strided_slice %7 {offsets = [0, 60], sizes = [16, 4], strides = [1, 1]} : vector<16x64xf32> to vector<16x4xf32>
    %cst_47 = arith.constant dense<0.000000e+00> : vector<8x16xf32>
    %125 = tpu.matmul %122, %123, %cst_47 {dimension_numbers = #tpu.dot_dimension_numbers<[1], [1], [0], [0], [0, 0, 1, 0], [], []>} : vector<8x4xf32>, vector<16x4xf32>, vector<8x16xf32> -> vector<8x16xf32>
    %cst_48 = arith.constant dense<0xFF800000> : vector<8xf32>
    %126 = vector.multi_reduction <maximumf>, %125, %cst_48 [1] : vector<8x16xf32> to vector<8xf32>
    %127 = vector.shape_cast %126 : vector<8xf32> to vector<8x1xf32>
    %128 = vector.broadcast %127 : vector<8x1xf32> to vector<8x16xf32>
    %129 = arith.subf %125, %128 : vector<8x16xf32>
    %130 = math.exp %129 : vector<8x16xf32>
    %cst_49 = arith.constant dense<0.000000e+00> : vector<8xf32>
    %131 = vector.multi_reduction <add>, %130, %cst_49 [1] : vector<8x16xf32> to vector<8xf32>
    %132 = vector.shape_cast %131 : vector<8xf32> to vector<8x1xf32>
    %133 = tpu.reciprocal %132 {approx = true} : vector<8x1xf32> -> vector<8x1xf32>
    %134 = vector.broadcast %133 : vector<8x1xf32> to vector<8x16xf32>
    %135 = arith.mulf %130, %134 : vector<8x16xf32>
    %cst_50 = arith.constant dense<0.000000e+00> : vector<8x4xf32>
    %136 = tpu.matmul %135, %124, %cst_50 {dimension_numbers = #tpu.dot_dimension_numbers<[1], [0], [0], [1], [0, 0, 1, 1], [], []>} : vector<8x16xf32>, vector<16x4xf32>, vector<8x4xf32> -> vector<8x4xf32>
    %c0_51 = arith.constant 0 : index
    %c28 = arith.constant 28 : index
    %137 = vector.load %arg8[%c0_51, %c28] : memref<8x32xf32, #tpu.memory_space<vmem>>, vector<8x4xf32>
    tpu.vector_store %arg8[%c0_51, %c28], %136 {strides = array<i32>} : memref<8x32xf32, #tpu.memory_space<vmem>>, vector<8x4xf32>,
    %c0_52 = arith.constant 0 : index
    %c0_53 = arith.constant 0 : index
    %138 = vector.load %arg8[%c0_52, %c0_53] : memref<8x32xf32, #tpu.memory_space<vmem>>, vector<8x32xf32>
    %c0_54 = arith.constant 0 : index
    %c0_55 = arith.constant 0 : index
    %139 = vector.load %arg5[%c0_54, %c0_55] : memref<32x32xf32, #tpu.memory_space<vmem>>, vector<32x32xf32>
    %cst_56 = arith.constant dense<0.000000e+00> : vector<8x32xf32>
    %140 = tpu.matmul %138, %139, %cst_56 {dimension_numbers = #tpu.dot_dimension_numbers<[1], [0], [0], [1], [0, 0, 1, 1], [], []>} : vector<8x32xf32>, vector<32x32xf32>, vector<8x32xf32> -> vector<8x32xf32>
    %c0_57 = arith.constant 0 : index
    %c0_58 = arith.constant 0 : index
    %141 = vector.load %arg6[%c0_57, %c0_58] : memref<1x32xf32, #tpu.memory_space<vmem>>, vector<1x32xf32>
    %142 = vector.broadcast %141 : vector<1x32xf32> to vector<8x32xf32>
    %143 = arith.addf %140, %142 : vector<8x32xf32>
    %c0_59 = arith.constant 0 : index
    %c0_60 = arith.constant 0 : index
    %c0_61 = arith.constant 0 : index
    %144 = vector.load %arg7[%c0_59, %c0_60, %c0_61] : memref<1x8x32xf32, #tpu.memory_space<vmem>>, vector<1x8x32xf32>
    %145 = vector.shape_cast %144 : vector<1x8x32xf32> to vector<8x32xf32>
    %146 = vector.shape_cast %143 : vector<8x32xf32> to vector<1x8x32xf32>
    tpu.vector_store %arg7[%c0_59, %c0_60, %c0_61], %146 {strides = array<i32>} : memref<1x8x32xf32, #tpu.memory_space<vmem>>, vector<1x8x32xf32>,
    return
  }
  func.func @transform_0(%arg0: i32) -> (i32, i32, i32) {
    %c0_i32 = arith.constant 0 : i32
    %c0_i32_0 = arith.constant 0 : i32
    %c0_i32_1 = arith.constant 0 : i32
    return %arg0, %c0_i32, %c0_i32_0 : i32, i32, i32
  }
  func.func @transform_1(%arg0: i32) -> (i32, i32, i32) {
    %c0_i32 = arith.constant 0 : i32
    %c0_i32_0 = arith.constant 0 : i32
    %c0_i32_1 = arith.constant 0 : i32
    return %arg0, %c0_i32, %c0_i32_0 : i32, i32, i32
  }
  func.func @transform_2(%arg0: i32) -> (i32, i32) {
    %c0_i32 = arith.constant 0 : i32
    %c0_i32_0 = arith.constant 0 : i32
    %c0_i32_1 = arith.constant 0 : i32
    return %c0_i32, %c0_i32_0 : i32, i32
  }
  func.func @transform_3(%arg0: i32) -> (i32, i32) {
    %c0_i32 = arith.constant 0 : i32
    %c0_i32_0 = arith.constant 0 : i32
    %c0_i32_1 = arith.constant 0 : i32
    return %c0_i32, %c0_i32_0 : i32, i32
  }
  func.func @transform_4(%arg0: i32) -> (i32, i32) {
    %c0_i32 = arith.constant 0 : i32
    %c0_i32_0 = arith.constant 0 : i32
    %c0_i32_1 = arith.constant 0 : i32
    return %c0_i32, %c0_i32_0 : i32, i32
  }
  func.func @transform_5(%arg0: i32) -> (i32, i32) {
    %c0_i32 = arith.constant 0 : i32
    %c0_i32_0 = arith.constant 0 : i32
    %c0_i32_1 = arith.constant 0 : i32
    return %c0_i32, %c0_i32_0 : i32, i32
  }
  func.func @transform_6(%arg0: i32) -> (i32, i32, i32) {
    %c0_i32 = arith.constant 0 : i32
    %c0_i32_0 = arith.constant 0 : i32
    %c0_i32_1 = arith.constant 0 : i32
    return %arg0, %c0_i32, %c0_i32_0 : i32, i32, i32
  }
}

</mosaic_0001>

<bundles_post_ra>
// kernel: tpu_custom_call.1
= control target key start
LH: loop header
LB: loop body
LE: loop exit
PB: predicated region body
PF: predicated region fallthrough
CT: control target
= control target key end

     0   :  { %s3509_s0 = inlined_call_operand.hbm [shape: f32[2,8,32], index: 0, kind: input, shape index: {}]   ;;  %s3510_s1 = inlined_call_operand.hbm [shape: f32[2,16,48], index: 1, kind: input, shape index: {}]   ;;  %s3511_s2 = inlined_call_operand.hbm [shape: f32[32,32], index: 2, kind: input, shape index: {}]   ;;  %s3512_s3 = inlined_call_operand.hbm [shape: f32[48,64], index: 3, kind: input, shape index: {}]   ;;  %s3513_s4 = inlined_call_operand.hbm [shape: f32[32,32], index: 4, kind: input, shape index: {}]   ;;  %s3514_s5 = inlined_call_operand.vmem [shape: f32[1,32], index: 5, kind: input, shape index: {}]   ;;  %s3515_s6 = inlined_call_operand.hbm [shape: f32[2,8,32], index: 6, kind: output, shape index: {}]  }
   0x1   :  { %3521 = sst [smem:[#allocation18_spill]] %s3509_s0 }
   0x2   :  { %3522 = sst [smem:[#allocation19_spill]] %s3511_s2 }
   0x3   :  { %11 = vsyncpa [#allocation4], 0 }
   0x4   :  { %13 = vsyncpa [#allocation4 + $0x1], 0 }
   0x5   :  { %14 = vsyncpa [#allocation7], 0 }
   0x6   :  { %16 = vsyncpa [#allocation7 + $0x1], 0 }
   0x7   :  { %17 = vsyncpa [#allocation10], 0 }
   0x8   :  { %18 = vsyncpa [#allocation5], 0 }
   0x9   :  { %20 = vsyncpa [#allocation5 + $0x1], 0  ;;  %s3022_s21 = smov 0   ;;  %s3024_s22 = smov 0  }
   0xa   :  { %s3026_s23 = smov 0   ;;  %s3028_s24 = smov 0  }
   0xb LB: > { %s3043_s25 = sadd.s32 4294967295, %s2952_s24   ;;  %s2159_s26 = sadd.s32 4294967294, %s2952_s24   ;;  %s2952_s24 = sphi %s3028_s24, %s3548_s24   ;;  %s2948_s23 = sphi %s3026_s23, %s3547_s23   ;;  %s2944_s22 = sphi %s3024_s22, %s3546_s22   ;;  %s2940_s21 = sphi %s3022_s21, %s3545_s21  }
   0xc   : > { %p46_p0 = scmp.ne.s32.totalorder %s2944_s22, %s2940_s21  ;;  %p3516_p1 = scmp.eq.s32.totalorder %s3043_s25, 0 }
   0xd   : > { %p186_p3 = scmp.eq.s32.totalorder %s2159_s26, 1  ;;  %p2160_p5 = scmp.ge.s32.totalorder %s2952_s24, 1 }
   0xe   : > { %p3052_p4 = por %p3516_p1, %p46_p0  ;;  %p193_p7 = scmp.lt.s32.totalorder %s2952_s24, 3 }
   0xf   : > { %p3057_p6 = por %p186_p3, %p46_p0  ;;  %s2954_s30 = smov [#allocation8]  }
  0x10   : > { %s3523_s27 = scalar_select %p3052_p4, 1, 0 }
  0x11   : > { %s3524_s28 = scalar_select %p3057_p6, 1, 0 }
  0x12   : > { %p3062_p8 = pnand %p2160_p5, %p193_p7  ;;  %s205_s7 = sshll.u32 %s2954_s30, 4  ;;  %s3066_s7 = int_to_ptr.vmem [resolvable:$true] %s205_s7 }
  0x13   : > { %s2955_s9 = smov [#allocation9]   ;;  %s2956_s11 = smov [#allocation11]  }
  0x14   : > { %s3525_s29 = scalar_select %p3062_p8, 1, 0 }
  0x15   : > { %p2532_p9 = pneg %p3062_p8  ;;  %s218_s10 = sshll.u32 %s2955_s9, 4  ;;  %s3077_s10 = int_to_ptr.vmem [resolvable:$true] %s218_s10 }
  0x16   : > { %s3079_s12 = sshll.u32 %s2956_s11, 4  ;;  %s3527_s2 = sld [smem:[#allocation19_spill]]  ;;  %s232_s12 = int_to_ptr.vmem [resolvable:$true] %s3079_s12 }
  0x17   : > { %p3073_p11 = pnand %p2532_p9, %p3516_p1 }
  0x19   : > { %p3089_p13 = pneg %p3073_p11 }
  0x1c   : > { %s2730_s15 = scalar_lea.hbm %s3527_s2, 512 }
  0x1d   : > { %p2731_p12 = scmp.ne.s32.totalorder %s3527_s2, %s2730_s15  ;;  %p2737_p5 = scmp.lt.u32.totalorder %s2730_s15, %s3527_s2 }
  0x1f   : > { %p2733_p0 = pnand %p3089_p13, %p2731_p12 }
  0x21   : > { %p2734_p3 = pneg %p2733_p0 }
  0x23   : > { %p2739_p7 = pnand %p2737_p5, %p2734_p3 }
  0x25   : > { %2742 = shalt.err (!%p2739_p7)
}
  0x26   : > { %s2743_s26 = scalar_lea.vmem %s3066_s7, 512  ;;  %p2751_p2 = scmp.lt.s32.totalorder %s3066_s7, %s3066_s7 }
  0x27   : > { %p2744_p9 = scmp.ne.s32.totalorder %s3066_s7, %s2743_s26  ;;  %p2752_p6 = scmp.lt.s32.totalorder %s2743_s26, %s2743_s26 }
  0x29   : > { %p2746_p10 = pnand %p2744_p9, %p3089_p13  ;;  %p2753_p12 = por %p2752_p6, %p2751_p2 }
  0x2b   : > { %p2747_p1 = pneg %p2746_p10 }
  0x2d   : > { %p2754_p0 = pnand %p2753_p12, %p2747_p1 }
  0x2f   : > { %2757 = shalt.err (!%p2754_p0)
}
  0x30   : > { %s3519_s30 = smov 128   ;;  %s3520_s9 = smov 8  }
  0x31   : > { %2535 = dma.hbm_to_vmem [thread:$0]  (!%p3073_p11), %s3527_s2, 512, %s3066_s7, [#allocation7], %s3519_s30, %s3519_s30, %s3520_s9  }
  0x32   : > { %s2758_s16 = scalar_lea.hbm %s3512_s3, 768 }
  0x33   : > { %p2759_p1 = scmp.ne.s32.totalorder %s3512_s3, %s2758_s16  ;;  %p2765_p10 = scmp.lt.u32.totalorder %s2758_s16, %s3512_s3 }
  0x35   : > { %p2761_p2 = pnand %p2759_p1, %p3089_p13 }
  0x37   : > { %p2762_p6 = pneg %p2761_p2 }
  0x39   : > { %p2767_p3 = pnand %p2765_p10, %p2762_p6 }
  0x3b   : > { %2770 = shalt.err (!%p2767_p3)
}
  0x3c   : > { %s2771_s7 = scalar_lea.vmem %s3077_s10, 768  ;;  %p2779_p12 = scmp.lt.s32.totalorder %s3077_s10, %s3077_s10 }
  0x3d   : > { %p2772_p5 = scmp.ne.s32.totalorder %s3077_s10, %s2771_s7  ;;  %p2780_p0 = scmp.lt.s32.totalorder %s2771_s7, %s2771_s7 }
  0x3f   : > { %p2774_p7 = pnand %p2772_p5, %p3089_p13  ;;  %p2781_p1 = por %p2780_p0, %p2779_p12 }
  0x41   : > { %p2775_p9 = pneg %p2774_p7 }
  0x43   : > { %p2782_p2 = pnand %p2781_p1, %p2775_p9 }
  0x45   : > { %2785 = shalt.err (!%p2782_p2)
}
  0x46   : > { %2538 = dma.hbm_to_vmem [thread:$0]  (!%p3073_p11), %s3512_s3, 768, %s3077_s10, [#allocation10], %s3519_s30, %s3519_s30, %s3520_s9  }
  0x47   : > { %s2786_s16 = scalar_lea.hbm %s3513_s4, 512 }
  0x48   : > { %p2787_p6 = scmp.ne.s32.totalorder %s3513_s4, %s2786_s16  ;;  %p2793_p5 = scmp.lt.u32.totalorder %s2786_s16, %s3513_s4 }
  0x4a   : > { %p2789_p10 = pnand %p2787_p6, %p3089_p13 }
  0x4c   : > { %p2790_p3 = pneg %p2789_p10 }
  0x4e   : > { %p2795_p7 = pnand %p2793_p5, %p2790_p3 }
  0x50   : > { %2798 = shalt.err (!%p2795_p7)
}
  0x51   : > { %s2799_s7 = scalar_lea.vmem %s232_s12, 512  ;;  %p2807_p1 = scmp.lt.s32.totalorder %s232_s12, %s232_s12 }
  0x52   : > { %p2800_p9 = scmp.ne.s32.totalorder %s232_s12, %s2799_s7  ;;  %p2808_p2 = scmp.lt.s32.totalorder %s2799_s7, %s2799_s7 }
  0x54   : > { %p2802_p12 = pnand %p2800_p9, %p3089_p13  ;;  %p2809_p4 = por %p2808_p2, %p2807_p1 }
  0x56   : > { %p2803_p0 = pneg %p2802_p12 }
  0x58   : > { %p2810_p8 = pnand %p2809_p4, %p2803_p0 }
  0x5a   : > { %2813 = shalt.err (!%p2810_p8)
}
  0x5b   : > { %2541 = dma.hbm_to_vmem [thread:$0]  (!%p3073_p11), %s3513_s4, 512, %s232_s12, [#allocation10], %s3519_s30, %s3519_s30, %s3520_s9  }
  0x5c   : > { %s3162_s18 = sadd.s32 1, %s2952_s24   ;;  %s33_s13 = sadd.s32 1, %s2948_s23 }
  0x5d   : > { %s30_s8 = ssub.s32 %s2952_s24, %s3162_s18  ;;  %p40_p8 = scmp.ne.s32.totalorder %s2948_s23, %s2944_s22 }
  0x5e   : > { %p31_p4 = scmp.eq.s32.totalorder %s30_s8, 0  ;;  %p41_p13 = scmp.eq.s32.totalorder %s2952_s24, 0 }
  0x5f   : > { %p2556_p6 = scmp.lt.s32.totalorder %s2952_s24, 2  ;;  %p3529_p3 = scmp.eq.s32.totalorder %s3043_s25, 1 }
  0x60   : > { %s3172_s14 = scalar_select %p31_p4, %s2948_s23, %s33_s13  }
  0x61   : > { %p42_p10 = por %p41_p13, %p40_p8  ;;  %p3176_p5 = por %p3529_p3, %p40_p8 }
  0x62   : > { %s3181_s16 = sand.u32 1, %s2948_s23   ;;  %s2166_s12 = sshll.u32 %s2952_s24, 7 }
  0x63   : > { %s2165_s17 = sshll.u32 %s3181_s16, 3  ;;  %s3531_s0 = sld [smem:[#allocation18_spill]] }
  0x64   : > { %s252_s7 = scalar_lea.vmem [#allocation3], %s2165_s17  ;;  %p3190_p11 = pnand %p2556_p6, %p42_p10 }
  0x65   : > { %s259_s10 = sshll.u32 %s252_s7, 4  ;;  %s2167_s8 = sshll.u32 %s3181_s16, 4  ;;  %s3194_s10 = int_to_ptr.vmem [resolvable:$true] %s259_s10 }
  0x66   : > { %s249_s13 = scalar_lea.sflag [#allocation4], %s3181_s16  ;;  %p2816_p9 = pneg %p3190_p11 }
  0x69   : > { %s3188_s26 = scalar_lea.hbm %s3531_s0, %s2166_s12  ;;  %s2819_s19 = scalar_lea.hbm %s3531_s0, 256 }
  0x6a   : > { %s2814_s30 = scalar_lea.hbm %s3188_s26, 128  ;;  %p2820_p1 = scmp.lt.u32.totalorder %s3188_s26, %s3531_s0 }
  0x6b   : > { %p2815_p7 = scmp.ne.s32.totalorder %s3188_s26, %s2814_s30  ;;  %p2821_p2 = scmp.lt.u32.totalorder %s2819_s19, %s2814_s30 }
  0x6c   : > { %p2823_p8 = scmp.lt.u32.totalorder %s2814_s30, %s3188_s26 }
  0x6d   : > { %p2817_p12 = pnand %p2816_p9, %p2815_p7  ;;  %p2822_p4 = por %p2821_p2, %p2820_p1 }
  0x6f   : > { %p2818_p0 = pneg %p2817_p12  ;;  %p2824_p13 = por %p2823_p8, %p2822_p4 }
  0x71   : > { %p2825_p6 = pnand %p2824_p13, %p2818_p0 }
  0x73   : > { %2828 = shalt.err (!%p2825_p6)
}
  0x74   : > { %s2829_s9 = scalar_lea.vmem %s3194_s10, 128  ;;  %s2959_s12 = smov [#allocation3]  }
  0x75   : > { %p2830_p10 = scmp.ne.s32.totalorder %s3194_s10, %s2829_s9  ;;  %s2834_s17 = sshll.u32 %s2959_s12, 4  ;;  %s2835_s17 = int_to_ptr.vmem [resolvable:$false] %s2834_s17 }
  0x76   : > { %s2836_s20 = scalar_lea.vmem %s2835_s17, 256  ;;  %p2837_p12 = scmp.lt.s32.totalorder %s3194_s10, %s2835_s17 }
  0x77   : > { %p2832_p3 = pnand %p2830_p10, %p2816_p9  ;;  %p2838_p1 = scmp.lt.s32.totalorder %s2836_s20, %s2829_s9 }
  0x79   : > { %p2833_p7 = pneg %p2832_p3  ;;  %p2839_p2 = por %p2838_p1, %p2837_p12 }
  0x7b   : > { %p2840_p4 = pnand %p2839_p2, %p2833_p7 }
  0x7d   : > { %2843 = shalt.err (!%p2840_p4)
}
  0x7e   : > { %2545 = dma.hbm_to_vmem [thread:$0]  (!%p3190_p11), %s3188_s26, 128, %s3194_s10, %s249_s13  }
  0x7f   : > { %s270_s30 = scalar_lea.vmem [#allocation6], %s2167_s8  ;;  %s266_s7 = sand.u32 1, %s2952_s24  }
  0x80   : > { %s277_s19 = sshll.u32 %s270_s30, 4  ;;  %s2218_s12 = sshll.u32 %s2952_s24, 8  ;;  %s3226_s19 = int_to_ptr.vmem [resolvable:$true] %s277_s19 }
  0x81   : > { %s3232_s20 = scalar_lea.hbm %s3510_s1, %s2218_s12  ;;  %s3234_s0 = scalar_lea.sflag [#allocation7], %s266_s7 }
  0x82   : > { %s2844_s2 = scalar_lea.hbm %s3232_s20, 256  ;;  %s2849_s10 = scalar_lea.hbm %s3510_s1, 512 }
  0x83   : > { %p2845_p0 = scmp.ne.s32.totalorder %s3232_s20, %s2844_s2  ;;  %p2850_p6 = scmp.lt.u32.totalorder %s3232_s20, %s3510_s1 }
  0x84   : > { %p2851_p10 = scmp.lt.u32.totalorder %s2849_s10, %s2844_s2  ;;  %p2853_p7 = scmp.lt.u32.totalorder %s2844_s2, %s3232_s20 }
  0x85   : > { %p2847_p8 = pnand %p2845_p0, %p2816_p9 }
  0x86   : > { %p2852_p3 = por %p2851_p10, %p2850_p6 }
  0x87   : > { %p2848_p13 = pneg %p2847_p8 }
  0x88   : > { %p2854_p12 = por %p2853_p7, %p2852_p3 }
  0x8a   : > { %p2855_p1 = pnand %p2854_p12, %p2848_p13 }
  0x8c   : > { %2858 = shalt.err (!%p2855_p1)
}
  0x8d   : > { %s2859_s30 = scalar_lea.vmem %s3226_s19, 256  ;;  %s2960_s7 = smov [#allocation6]  }
  0x8e   : > { %p2860_p2 = scmp.ne.s32.totalorder %s3226_s19, %s2859_s30  ;;  %s2864_s12 = sshll.u32 %s2960_s7, 4  ;;  %s2865_s12 = int_to_ptr.vmem [resolvable:$false] %s2864_s12 }
  0x8f   : > { %s2866_s9 = scalar_lea.vmem %s2865_s12, 512  ;;  %p2867_p8 = scmp.lt.s32.totalorder %s3226_s19, %s2865_s12 }
  0x90   : > { %p2862_p4 = pnand %p2860_p2, %p2816_p9  ;;  %p2868_p6 = scmp.lt.s32.totalorder %s2866_s9, %s2859_s30 }
  0x92   : > { %p2863_p0 = pneg %p2862_p4  ;;  %p2869_p10 = por %p2868_p6, %p2867_p8 }
  0x94   : > { %p2870_p3 = pnand %p2869_p10, %p2863_p0 }
  0x96   : > { %2873 = shalt.err (!%p2870_p3)
}
  0x97   : > { %s3533_s2 = smov 8   ;;  %s3534_s17 = smov 128  }
  0x98   : > { %2548 = dma.hbm_to_vmem [thread:$0]  (!%p3190_p11), %s3232_s20, 256, %s3226_s19, %s3234_s0, %s3534_s17, %s3534_s17, %s3533_s2  }
  0x99   : > { %p3535_p9 = scmp.ne.s32.totalorder %s3525_s29, 0 }
  0x9a   : > { %s3266_s16 = sand.u32 (!%p3535_p9), 1, %s2944_s22   ;;  %p3536_p13 = scmp.ne.s32.totalorder (!%p3535_p9), %s3523_s27, 0 }
  0x9b   : > { %289 = sbr.rel (%p3535_p9) target bundleno = 4823 (0x12d7), region = 44  ;;  %s2171_s26 = sshll.u32 (!%p3535_p9), %s3266_s16, 3 }
  0x9c   : > { %s292_s10 = scalar_lea.sflag (!%p3535_p9), [#allocation4], %s3266_s16  ;;  %s3272_s11 = scalar_lea.vmem (!%p3535_p9), [#allocation3], %s2171_s26 }
  0xa2   : > { %2919 = dma.done.wait (%p3536_p13), %s292_s10, 128  }
  0xa3   : > { %2921 = vsyncadd (%p3536_p13), %s292_s10, 4294967168  ;;  %s300_s0 = sand.u32 1, %s3043_s25   ;;  %s2172_s29 = sshll.u32 %s3266_s16, 4 }
  0xa4   : > { %s301_s19 = scalar_lea.sflag [#allocation7], %s300_s0  ;;  %s3280_s20 = scalar_lea.vmem [#allocation6], %s2172_s29 }
  0xa5   : > { %2923 = dma.done.wait (%p3536_p13), %s301_s19, 256  }
  0xa6   : > { %2925 = vsyncadd (%p3536_p13), %s301_s19, 4294967040  ;;  %p3537_p11 = scmp.eq.s32.totalorder %s3043_s25, 0 }
  0xa8   : > { %2927 = dma.done.wait (%p3537_p11), [#allocation7], 512   ;;  %p3538_p7 = pmov %p3537_p11 }
  0xaa   : > { %2929 = vsyncadd (%p3538_p7), [#allocation7], 4294966784  ;;  %p3539_p12 = pmov %p3538_p7 }
  0xab   : > { %p3540_p1 = pmov %p3538_p7 }
  0xac   : > { %2931 = dma.done.wait (%p3539_p12), [#allocation10], 1280  }
  0xad   : > { %2933 = vsyncadd (%p3540_p1), [#allocation10], 4294966016  ;;  %v2961_v0 = vmov 0.0|0.0   ;;  %vm2962_vm0 = vmmov 0   ;;  %v2963_v1 = vmov 0.0   ;;  %v431_v2 = vld [vmem:[#allocation9] sm:$0xff] }
  0xae   : > { %2434 = vmatprep.subr.bf16.mxu0 %v2961_v0  ;;  %2293 = vmatprep.mubr.msk.f32.mxu0 %vm2962_vm0, %v2963_v1  ;;  %v432_v3 = vld [vmem:[#allocation9 + $0x8] sm:$0xff]  ;;  %v433_v4 = vld [vmem:[#allocation9 + $0x10] sm:$0xff]  ;;  %vm437_vm1 = vcmask 392192   ;;  %v434_v6 = vld [vmem:[#allocation9 + $0x18] sm:$0xff]  ;;  %vm357_vm2 = vcmask 261120   ;;  %vm520_vm3 = vcmask 31744  }
  0xaf   : > { %v2440_v5 = vpack.c.bf16 %v432_v3, %v431_v2  ;;  %v435_v7 = vld [vmem:[#allocation9 + $0x20] sm:$0xff]  ;;  %v2444_v8 = vpack.c.bf16 %v434_v6, %v433_v4  ;;  %v436_v9 = vld [vmem:[#allocation9 + $0x28] sm:$0xff]  ;;  %v355_v13 = vld [vmem:[#allocation8 + $0x10] sm:$0xff]  ;;  %s2964_s27 = smov 124   ;;  %vm600_vm5 = vcmask 130048   ;;  %s2965_s8 = smov 96  }
  0xb0   : > { %v351_v10 = vld [vmem:[%s3280_s20] sm:$0xff]  ;;  %v354_v12 = vld [vmem:[#allocation8 + $0x8] sm:$0xff]  ;;  %v356_v14 = vld [vmem:[#allocation8 + $0x18] sm:$0xff]  ;;  %v2448_v16 = vpack.c.bf16 %v436_v9, %v435_v7  ;;  %s2966_s13 = smov 92   ;;  %s2967_s30 = smov 120   ;;  %vm868_vm6 = vcmask 64544  }
  0xb1   : > { %v353_v11 = vld [vmem:[#allocation8] sm:$0xff]  ;;  %2441 = vmatprep.subr.bf16.mxu1 %v2440_v5  ;;  %2308 = vmatprep.mubr.msk.f32.mxu1 %vm437_vm1, %v351_v10  ;;  %v2438_v17 = vpack.c.bf16 %v356_v14, %v355_v13  ;;  %v350_v18 = vld [vmem:[%s3272_s11] sm:$0xff]  ;;  %vm3312_vm4 = vmpackc.low %vm520_vm3, %vm520_vm3  ;;  %s2968_s7 = smov 88   ;;  %s2969_s12 = smov 116   ;;  %vm1046_vm7 = vcmask 97344   ;;  %vm1224_vm8 = vcmask 130144  }
  0xb2   : > { %2443 = vmatpush3.bf16.msra.mxu1 %v2440_v5  ;;  %v2435_v15 = vpack.c.bf16 %v354_v12, %v353_v11  ;;  %v352_v19 = vld [vmem:[%s3280_s20 + $0x8] sm:$0xff]  ;;  %s2970_s9 = smov 84   ;;  %s2971_s2 = smov 112   ;;  %vm1402_vm9 = vcmask 162944   ;;  %vm1580_vm10 = vcmask 195744   ;;  %vm1758_vm11 = vcmask 228544  }
  0xb3   : > { %2445 = vmatprep.subr.bf16.mxu1 %v2444_v8  ;;  %s2972_s17 = smov 80   ;;  %s2973_s10 = smov 108   ;;  %vm1936_vm12 = vcmask 261344  }
  0xb4   : > { %2436 = vmatpush3.bf16.msra.mxu0 %v2435_v15  ;;  %s2974_s11 = smov 76   ;;  %s2975_s0 = smov 104  }
  0xb5   : > { %2437 = vmatprep.subr.bf16.mxu0 %v2961_v0  ;;  %s2976_s29 = smov 72   ;;  %s2977_s19 = smov 100  }
  0xb6   : > { %2447 = vmatpush3.bf16.msra.mxu1 %v2444_v8  ;;  %s2978_s20 = smov 12  }
  0xb7   : > { %2449 = vmatprep.subr.bf16.mxu1 %v2448_v16 }
  0xb8   : > { %2439 = vmatpush3.bf16.msra.mxu0 %v2438_v17 }
  0xb9   : > { %2452 = vmatprep.subr.bf16.mxu0 %v2961_v0 }
  0xba   : > { %2451 = vmatpush3.bf16.msra.mxu1 %v2448_v16 }
  0xbb   : > { %2294 = vmatmul.mubr.msk.f32.vlgmr.msra.gmra.mrb[0].mxu0 %vm357_vm2, %v350_v18  ;;  %2456 = vmatprep.subr.bf16.mxu1 %v2961_v0 }
  0xbc   : > { %2315 = vmatprep.mubr.msk.f32.mxu0 %vm2962_vm0, %v2963_v1 }
  0xbd   : > { %2309 = vmatmul.mubr.msk.f32.vlgmr.msra.gmra.mrb[0].mxu1 %vm437_vm1, %v352_v19 }
  0xbe   : > { %2322 = vmatprep.mubr.msk.f32.mxu1 %vm2962_vm0, %v2963_v1 }
 0x18e   : > { %v427_v20 = vpop.f32.mrb[0].mxu0 }
 0x18f   : > { %v2295_v21 = vpop.f32.mrb[1].mxu0  ;;  %v3322_v27 = vmul.f32 0.5, %v427_v20 }
 0x190   : > { %v2310_v22 = vpop.f32.mrb[0].mxu1 }
 0x191   : > { %v510_v23 = vpop.f32.mrb[1].mxu1 }
 0x192   : > { %v3316_v25 = vpack.i.bf16 %v2310_v22, %v510_v23  ;;  %v2453_v26 = vpack.c.bf16 %v2310_v22, %v510_v23 }
 0x194   : > { %2624 = vrot.lane.b32.xlu0 %v3316_v25, %s2964_s27  ;;  %2455 = vmatpush3.bf16.xpose.msk.msra.mxu0 %vm3312_vm4, %v2453_v26 }
 0x195   : > { %2459 = vmatprep.subr.bf16.mxu0 %v2961_v0 }
 0x198   : > { %692 = vrot.lane.b32.xlu0 %v3322_v27, %s2964_s27  ;;  %s2979_s27 = smov 68  }
 0x19b   : > { %2316 = vmatmul.mubr.msk.f32.vlgmr.msra.gmra.mrb[2].mxu0 %vm520_vm3, %v3322_v27 }
 0x19c   : > { %2329 = vmatprep.mubr.msk.f32.mxu0 %vm2962_vm0, %v2963_v1 }
 0x206   : > { %v2625_v28 = vpop.permute.xlu0 %2624 }
 0x207   : > { %v2627_v29 = vunpack.i.h.bf16 %v2625_v28  ;;  %v2626_v30 = vunpack.i.l.bf16 %v2625_v28 }
 0x209   : > { %v2460_v31 = vpack.c.bf16 %v2627_v29, %v2626_v30 }
 0x20a   : > { %v693_v32 = vpop.permute.xlu0 %692 }
 0x20b   : > { %2462 = vmatpush3.bf16.xpose.msk.msra.mxu0 %vm3312_vm4, %v2460_v31 }
 0x20c   : > { %2470 = vmatprep.subr.bf16.mxu0 %v2961_v0 }
 0x212   : > { %2330 = vmatmul.mubr.msk.f32.vlgmr.msra.gmra.mrb[4].mxu0 %vm520_vm3, %v693_v32 }
 0x213   : > { %2350 = vmatprep.mubr.msk.f32.mxu0 %vm2962_vm0, %v2963_v1 }
 0x26e   : > { %v596_v33 = vpop.f32.mrb[2].mxu0 }
 0x26f   : > { %v601_v34 = vsel %vm600_vm5, %v596_v33, -inf  ;;  %v2317_v35 = vpop.f32.mrb[3].mxu0 }
 0x270   : > { %602 = vmax.xlane.f32.xlu1 %v601_v34 }
 0x2e5   : > { %v770_v36 = vpop.f32.mrb[4].mxu0 }
 0x2e6   : > { %v2331_v37 = vpop.f32.mrb[5].mxu0  ;;  %v774_v38 = vsel %vm600_vm5, %v770_v36, -inf }
 0x2e7   : > { %775 = vmax.xlane.f32.xlu1 %v774_v38 }
 0x2f8   : > { %2629 = vrot.lane.b32.xlu1 %v3316_v25, %s2965_s8  ;;  %s2980_s8 = smov 4  }
 0x2fc   : > { %2634 = vrot.lane.b32.xlu1 %v3316_v25, %s2966_s13  ;;  %s2981_s13 = smov 8  }
 0x2fd   : > { %v603_v39 = vpop.xlane.xlu1 %602 }
 0x2fe   : > { %v604_v40 = vsub.f32 %v596_v33, %v603_v39 }
 0x300   : > { %v605_v41 = vmul.f32 1.442695, %v604_v40  ;;  %2639 = vrot.lane.b32.xlu1 %v3316_v25, %s2967_s30 }
 0x302   : > { %2698 = vpow2.f32 %v605_v41 }
 0x30c   : > { %v2699_v42 = vpop.eup %2698 }
 0x30d   : > { %v607_v43 = vsel %vm600_vm5, %v2699_v42, 0.0 }
 0x30e   : > { %608 = vadd.xlane.f32.xlu0 %v607_v43 }
 0x374   : > { %v776_v44 = vpop.xlane.xlu1 %775 }
 0x375   : > { %v777_v45 = vsub.f32 %v770_v36, %v776_v44 }
 0x377   : > { %v778_v46 = vmul.f32 1.442695, %v777_v45 }
 0x378   : > { %v2630_v47 = vpop.permute.xlu1 %2629 }
 0x379   : > { %2700 = vpow2.f32 %v778_v46  ;;  %v2632_v48 = vunpack.i.h.bf16 %v2630_v47  ;;  %v2631_v49 = vunpack.i.l.bf16 %v2630_v47 }
 0x37b   : > { %v2457_v50 = vpack.c.bf16 %v2632_v48, %v2631_v49 }
 0x37c   : > { %v2635_v54 = vpop.permute.xlu1 %2634 }
 0x37d   : > { %2458 = vmatpush3.bf16.msra.mxu1 %v2457_v50  ;;  %v2637_v55 = vunpack.i.h.bf16 %v2635_v54  ;;  %v2636_v56 = vunpack.i.l.bf16 %v2635_v54 }
 0x37e   : > { %2463 = vmatprep.subr.bf16.mxu1 %v2961_v0 }
 0x37f   : > { %v2464_v59 = vpack.c.bf16 %v2637_v55, %v2636_v56 }
 0x380   : > { %v2640_v60 = vpop.permute.xlu1 %2639 }
 0x381   : > { %v2642_v62 = vunpack.i.h.bf16 %v2640_v60  ;;  %v2641_v63 = vunpack.i.l.bf16 %v2640_v60 }
 0x383   : > { %v2701_v51 = vpop.eup %2700  ;;  %v2467_v4 = vpack.c.bf16 %v2642_v62, %v2641_v63 }
 0x384   : > { %v780_v52 = vsel %vm600_vm5, %v2701_v51, 0.0 }
 0x385   : > { %781 = vadd.xlane.f32.xlu1 %v780_v52 }
 0x396   : > { %870 = vrot.lane.b32.xlu1 %v3322_v27, %s2967_s30  ;;  %s2982_s30 = smov 16  }
 0x39b   : > { %v609_v53 = vpop.xlane.xlu0 %608 }
 0x39c   : > { %2702 = vrcp.f32 %v609_v53 }
 0x3a6   : > { %v2703_v57 = vpop.eup %2702 }
 0x3a7   : > { %v611_v58 = vmul.f32 %v2703_v57, %v2699_v42 }
 0x3a9   : > { %2323 = vmatmul.mubr.msk.f32.vlgmr.msra.gmra.mrb[2].mxu1 %vm600_vm5, %v611_v58 }
 0x3aa   : > { %2465 = vmatpush3.bf16.msra.mxu1 %v2464_v59  ;;  %2336 = vmatprep.mubr.msk.f32.mxu1 %vm2962_vm0, %v2963_v1 }
 0x3ab   : > { %2466 = vmatprep.subr.bf16.mxu1 %v2961_v0 }
 0x412   : > { %v782_v61 = vpop.xlane.xlu1 %781 }
 0x413   : > { %2704 = vrcp.f32 %v782_v61 }
 0x416   : > { %v871_v5 = vpop.permute.xlu1 %870 }
 0x41d   : > { %v2705_v2 = vpop.eup %2704 }
 0x41e   : > { %v784_v3 = vmul.f32 %v2705_v2, %v2701_v51 }
 0x420   : > { %2337 = vmatmul.mubr.msk.f32.vlgmr.msra.gmra.mrb[4].mxu1 %vm600_vm5, %v784_v3 }
 0x421   : > { %2469 = vmatpush3.bf16.xpose.msk.msra.mxu1 %vm3312_vm4, %v2467_v4  ;;  %2343 = vmatprep.mubr.msk.f32.mxu1 %vm2962_vm0, %v2963_v1 }
 0x422   : > { %2477 = vmatprep.subr.bf16.mxu1 %v2961_v0 }
 0x428   : > { %2344 = vmatmul.mubr.msk.f32.vlgmr.msra.gmra.mrb[6].mxu1 %vm520_vm3, %v871_v5 }
 0x429   : > { %2364 = vmatprep.mubr.msk.f32.mxu1 %vm2962_vm0, %v2963_v1 }
 0x47c   : > { %v687_v6 = vpop.f32.mrb[2].mxu1 }
 0x47d   : > { %691 = vst.msk [vmem:[#allocation2] sm:$0xff] %vm520_vm3, %v687_v6  ;;  %v2324_v7 = vpop.f32.mrb[3].mxu1 }
 0x4f3   : > { %v3358_v8 = vpop.f32.mrb[4].mxu1 }
 0x4f4   : > { %v2338_v9 = vpop.f32.mrb[5].mxu1 }
 0x4fb   : > { %v948_v10 = vpop.f32.mrb[6].mxu1 }
 0x4fc   : > { %v2345_v11 = vpop.f32.mrb[7].mxu1  ;;  %v952_v12 = vsel %vm600_vm5, %v948_v10, -inf }
 0x4fd   : > { %953 = vmax.xlane.f32.xlu0 %v952_v12 }
 0x513   : > { %2644 = vrot.lane.b32.xlu0 %v3316_v25, %s2968_s7  ;;  %s2983_s7 = smov 20  }
 0x517   : > { %2649 = vrot.lane.b32.xlu0 %v3316_v25, %s2969_s12 }
 0x51b   : > { %1048 = vrot.lane.b32.xlu0 %v3322_v27, %s2969_s12  ;;  %s2984_s12 = smov 24  }
 0x58a   : > { %v954_v13 = vpop.xlane.xlu0 %953 }
 0x58b   : > { %v955_v14 = vsub.f32 %v948_v10, %v954_v13 }
 0x58d   : > { %v956_v15 = vmul.f32 1.442695, %v955_v14 }
 0x58e   : > { %v2645_v16 = vpop.permute.xlu0 %2644 }
 0x58f   : > { %2706 = vpow2.f32 %v956_v15  ;;  %v2647_v17 = vunpack.i.h.bf16 %v2645_v16  ;;  %v2646_v18 = vunpack.i.l.bf16 %v2645_v16 }
 0x591   : > { %v2471_v19 = vpack.c.bf16 %v2647_v17, %v2646_v18 }
 0x592   : > { %v2650_v29 = vpop.permute.xlu0 %2649 }
 0x593   : > { %2472 = vmatpush3.bf16.msra.mxu0 %v2471_v19  ;;  %v2652_v31 = vunpack.i.h.bf16 %v2650_v29  ;;  %v2651_v32 = vunpack.i.l.bf16 %v2650_v29 }
 0x594   : > { %2473 = vmatprep.subr.bf16.mxu0 %v2961_v0 }
 0x595   : > { %v2474_v35 = vpack.c.bf16 %v2652_v31, %v2651_v32 }
 0x596   : > { %v1049_v36 = vpop.permute.xlu0 %1048 }
 0x599   : > { %v2707_v20 = vpop.eup %2706 }
 0x59a   : > { %v958_v21 = vsel %vm600_vm5, %v2707_v20, 0.0 }
 0x59b   : > { %959 = vadd.xlane.f32.xlu1 %v958_v21 }
 0x5ac   : > { %2654 = vrot.lane.b32.xlu1 %v3316_v25, %s2970_s9  ;;  %s2985_s9 = smov 28  }
 0x5b0   : > { %2659 = vrot.lane.b32.xlu1 %v3316_v25, %s2971_s2 }
 0x628   : > { %v960_v22 = vpop.xlane.xlu1 %959 }
 0x629   : > { %2708 = vrcp.f32 %v960_v22 }
 0x62c   : > { %v2655_v23 = vpop.permute.xlu1 %2654 }
 0x62d   : > { %v2657_v26 = vunpack.i.h.bf16 %v2655_v23  ;;  %v2656_v28 = vunpack.i.l.bf16 %v2655_v23 }
 0x62f   : > { %v2478_v30 = vpack.c.bf16 %v2657_v26, %v2656_v28 }
 0x630   : > { %v2660_v47 = vpop.permute.xlu1 %2659 }
 0x631   : > { %2479 = vmatpush3.bf16.msra.mxu1 %v2478_v30  ;;  %v2662_v49 = vunpack.i.h.bf16 %v2660_v47  ;;  %v2661_v50 = vunpack.i.l.bf16 %v2660_v47 }
 0x632   : > { %2480 = vmatprep.subr.bf16.mxu1 %v2961_v0 }
 0x633   : > { %v2709_v33 = vpop.eup %2708  ;;  %v2481_v53 = vpack.c.bf16 %v2662_v49, %v2661_v50 }
 0x634   : > { %v962_v34 = vmul.f32 %v2709_v33, %v2707_v20 }
 0x636   : > { %2351 = vmatmul.mubr.msk.f32.vlgmr.msra.gmra.mrb[6].mxu0 %vm600_vm5, %v962_v34 }
 0x637   : > { %2476 = vmatpush3.bf16.xpose.msk.msra.mxu0 %vm3312_vm4, %v2474_v35  ;;  %2357 = vmatprep.mubr.msk.f32.mxu0 %vm2962_vm0, %v2963_v1 }
 0x638   : > { %2484 = vmatprep.subr.bf16.mxu0 %v2961_v0 }
 0x63e   : > { %2358 = vmatmul.mubr.msk.f32.vlgmr.msra.gmra.mrb[8].mxu0 %vm520_vm3, %v1049_v36 }
 0x63f   : > { %2378 = vmatprep.mubr.msk.f32.mxu0 %vm2962_vm0, %v2963_v1 }
 0x709   : > { %v3379_v37 = vpop.f32.mrb[6].mxu0 }
 0x70a   : > { %v2352_v38 = vpop.f32.mrb[7].mxu0 }
 0x711   : > { %v1126_v39 = vpop.f32.mrb[8].mxu0 }
 0x712   : > { %v2359_v40 = vpop.f32.mrb[9].mxu0  ;;  %v1130_v41 = vsel %vm600_vm5, %v1126_v39, -inf }
 0x713   : > { %1131 = vmax.xlane.f32.xlu0 %v1130_v41 }
 0x7a0   : > { %v1132_v42 = vpop.xlane.xlu0 %1131 }
 0x7a1   : > { %v1133_v43 = vsub.f32 %v1126_v39, %v1132_v42 }
 0x7a3   : > { %v1134_v44 = vmul.f32 1.442695, %v1133_v43 }
 0x7a5   : > { %2710 = vpow2.f32 %v1134_v44 }
 0x7af   : > { %v2711_v45 = vpop.eup %2710 }
 0x7b0   : > { %v1136_v46 = vsel %vm600_vm5, %v2711_v45, 0.0 }
 0x7b1   : > { %1137 = vadd.xlane.f32.xlu1 %v1136_v46 }
 0x7c2   : > { %1226 = vrot.lane.b32.xlu1 %v3322_v27, %s2971_s2 }
 0x83e   : > { %v1138_v48 = vpop.xlane.xlu1 %1137 }
 0x83f   : > { %2712 = vrcp.f32 %v1138_v48 }
 0x842   : > { %v1227_v54 = vpop.permute.xlu1 %1226 }
 0x849   : > { %v2713_v51 = vpop.eup %2712 }
 0x84a   : > { %v1140_v52 = vmul.f32 %v2713_v51, %v2711_v45 }
 0x84c   : > { %2365 = vmatmul.mubr.msk.f32.vlgmr.msra.gmra.mrb[8].mxu1 %vm600_vm5, %v1140_v52 }
 0x84d   : > { %2483 = vmatpush3.bf16.xpose.msk.msra.mxu1 %vm3312_vm4, %v2481_v53  ;;  %2371 = vmatprep.mubr.msk.f32.mxu1 %vm2962_vm0, %v2963_v1 }
 0x84e   : > { %2491 = vmatprep.subr.bf16.mxu1 %v2961_v0 }
 0x854   : > { %2372 = vmatmul.mubr.msk.f32.vlgmr.msra.gmra.mrb[10].mxu1 %vm520_vm3, %v1227_v54 }
 0x855   : > { %2392 = vmatprep.mubr.msk.f32.mxu1 %vm2962_vm0, %v2963_v1 }
 0x91f   : > { %v3394_v55 = vpop.f32.mrb[8].mxu1 }
 0x920   : > { %v2366_v56 = vpop.f32.mrb[9].mxu1 }
 0x927   : > { %v1304_v57 = vpop.f32.mrb[10].mxu1 }
 0x928   : > { %v2373_v58 = vpop.f32.mrb[11].mxu1  ;;  %v1308_v59 = vsel %vm600_vm5, %v1304_v57, -inf }
 0x929   : > { %1309 = vmax.xlane.f32.xlu0 %v1308_v59 }
 0x93f   : > { %2664 = vrot.lane.b32.xlu0 %v3316_v25, %s2972_s17 }
 0x943   : > { %2669 = vrot.lane.b32.xlu0 %v3316_v25, %s2973_s10 }
 0x947   : > { %1404 = vrot.lane.b32.xlu0 %v3322_v27, %s2973_s10  ;;  %s2215_s10 = sshll.u32 %s3043_s25, 7 }
 0x9b6   : > { %v1310_v60 = vpop.xlane.xlu0 %1309 }
 0x9b7   : > { %v1311_v61 = vsub.f32 %v1304_v57, %v1310_v60 }
 0x9b9   : > { %v1312_v62 = vmul.f32 1.442695, %v1311_v61 }
 0x9ba   : > { %v2665_v63 = vpop.permute.xlu0 %2664 }
 0x9bb   : > { %2714 = vpow2.f32 %v1312_v62  ;;  %v2667_v2 = vunpack.i.h.bf16 %v2665_v63  ;;  %v2666_v3 = vunpack.i.l.bf16 %v2665_v63 }
 0x9bd   : > { %v2485_v4 = vpack.c.bf16 %v2667_v2, %v2666_v3 }
 0x9be   : > { %v2670_v12 = vpop.permute.xlu0 %2669 }
 0x9bf   : > { %2486 = vmatpush3.bf16.msra.mxu0 %v2485_v4  ;;  %v2672_v14 = vunpack.i.h.bf16 %v2670_v12  ;;  %v2671_v15 = vunpack.i.l.bf16 %v2670_v12 }
 0x9c0   : > { %2487 = vmatprep.subr.bf16.mxu0 %v2961_v0 }
 0x9c1   : > { %v2488_v18 = vpack.c.bf16 %v2672_v14, %v2671_v15 }
 0x9c2   : > { %v1405_v19 = vpop.permute.xlu0 %1404 }
 0x9c5   : > { %v2715_v5 = vpop.eup %2714 }
 0x9c6   : > { %v1314_v6 = vsel %vm600_vm5, %v2715_v5, 0.0 }
 0x9c7   : > { %1315 = vadd.xlane.f32.xlu1 %v1314_v6 }
 0x9d8   : > { %2674 = vrot.lane.b32.xlu1 %v3316_v25, %s2974_s11  ;;  %s349_s11 = scalar_lea.vmem [#allocation12], %s2171_s26  ;;  %s2986_s26 = smov [#allocation12]  }
 0x9dc   : > { %2679 = vrot.lane.b32.xlu1 %v3316_v25, %s2975_s0 }
 0xa54   : > { %v1316_v7 = vpop.xlane.xlu1 %1315 }
 0xa55   : > { %2716 = vrcp.f32 %v1316_v7 }
 0xa58   : > { %v2675_v9 = vpop.permute.xlu1 %2674 }
 0xa59   : > { %v2677_v10 = vunpack.i.h.bf16 %v2675_v9  ;;  %v2676_v11 = vunpack.i.l.bf16 %v2675_v9 }
 0xa5b   : > { %v2492_v13 = vpack.c.bf16 %v2677_v10, %v2676_v11 }
 0xa5c   : > { %v2680_v33 = vpop.permute.xlu1 %2679 }
 0xa5d   : > { %2493 = vmatpush3.bf16.msra.mxu1 %v2492_v13  ;;  %v2682_v35 = vunpack.i.h.bf16 %v2680_v33  ;;  %v2681_v36 = vunpack.i.l.bf16 %v2680_v33  ;;  %v2212_v33 = vld [vmem:[%s3514_s5] ss:$0 sm:$0xff] }
 0xa5e   : > { %2494 = vmatprep.subr.bf16.mxu1 %v2961_v0 }
 0xa5f   : > { %v2717_v16 = vpop.eup %2716  ;;  %v2495_v40 = vpack.c.bf16 %v2682_v35, %v2681_v36 }
 0xa60   : > { %v1318_v17 = vmul.f32 %v2717_v16, %v2715_v5 }
 0xa62   : > { %2379 = vmatmul.mubr.msk.f32.vlgmr.msra.gmra.mrb[10].mxu0 %vm600_vm5, %v1318_v17 }
 0xa63   : > { %2490 = vmatpush3.bf16.xpose.msk.msra.mxu0 %vm3312_vm4, %v2488_v18  ;;  %2385 = vmatprep.mubr.msk.f32.mxu0 %vm2962_vm0, %v2963_v1 }
 0xa64   : > { %2498 = vmatprep.subr.bf16.mxu0 %v2961_v0 }
 0xa6a   : > { %2386 = vmatmul.mubr.msk.f32.vlgmr.msra.gmra.mrb[12].mxu0 %vm520_vm3, %v1405_v19 }
 0xa6b   : > { %2406 = vmatprep.mubr.msk.f32.mxu0 %vm2962_vm0, %v2963_v1 }
 0xb35   : > { %v3415_v20 = vpop.f32.mrb[10].mxu0 }
 0xb36   : > { %v2380_v21 = vpop.f32.mrb[11].mxu0 }
 0xb37   : > { %v1939_v21 = vld [vmem:[#allocation11] sm:$0xff] }
 0xb3d   : > { %v1482_v22 = vpop.f32.mrb[12].mxu0 }
 0xb3e   : > { %v2387_v23 = vpop.f32.mrb[13].mxu0  ;;  %v1486_v26 = vsel %vm600_vm5, %v1482_v22, -inf }
 0xb3f   : > { %1487 = vmax.xlane.f32.xlu0 %v1486_v26  ;;  %v1941_v26 = vld [vmem:[#allocation11 + $0x10] sm:$0xff] }
 0xbcc   : > { %v1488_v28 = vpop.xlane.xlu0 %1487 }
 0xbcd   : > { %v1489_v29 = vsub.f32 %v1482_v22, %v1488_v28  ;;  %v1940_v22 = vld [vmem:[#allocation11 + $0x8] sm:$0xff]  ;;  %v1942_v28 = vld [vmem:[#allocation11 + $0x18] sm:$0xff] }
 0xbce   : > { %v2509_v23 = vpack.c.bf16 %v1940_v22, %v1939_v21 }
 0xbcf   : > { %v1490_v30 = vmul.f32 1.442695, %v1489_v29  ;;  %v2512_v29 = vpack.c.bf16 %v1942_v28, %v1941_v26 }
 0xbd1   : > { %2718 = vpow2.f32 %v1490_v30 }
 0xbdb   : > { %v2719_v31 = vpop.eup %2718 }
 0xbdc   : > { %v1492_v32 = vsel %vm600_vm5, %v2719_v31, 0.0 }
 0xbdd   : > { %1493 = vadd.xlane.f32.xlu1 %v1492_v32 }
 0xbee   : > { %1582 = vrot.lane.b32.xlu1 %v3322_v27, %s2975_s0  ;;  %s2038_s0 = sshll.u32 %s349_s11, 4  ;;  %s3466_s0 = int_to_ptr.vmem [resolvable:$true] %s2038_s0 }
 0xbef   : > { %s2874_s25 = scalar_lea.vmem %s3466_s0, 128 }
 0xbf0   : > { %p2875_p2 = scmp.ne.s32.totalorder %s3466_s0, %s2874_s25 }
 0xbf2   : > { %p2876_p4 = pnand %p2875_p2, %p3176_p5 }
 0xbf4   : > { %p2877_p0 = pneg %p2876_p4 }
 0xc6a   : > { %v1494_v34 = vpop.xlane.xlu1 %1493 }
 0xc6b   : > { %2720 = vrcp.f32 %v1494_v34 }
 0xc6e   : > { %v1583_v41 = vpop.permute.xlu1 %1582 }
 0xc75   : > { %v2721_v38 = vpop.eup %2720 }
 0xc76   : > { %v1496_v39 = vmul.f32 %v2721_v38, %v2719_v31 }
 0xc78   : > { %2393 = vmatmul.mubr.msk.f32.vlgmr.msra.gmra.mrb[12].mxu1 %vm600_vm5, %v1496_v39 }
 0xc79   : > { %2497 = vmatpush3.bf16.xpose.msk.msra.mxu1 %vm3312_vm4, %v2495_v40  ;;  %2399 = vmatprep.mubr.msk.f32.mxu1 %vm2962_vm0, %v2963_v1 }
 0xc7a   : > { %2505 = vmatprep.subr.bf16.mxu1 %v2961_v0 }
 0xc80   : > { %2400 = vmatmul.mubr.msk.f32.vlgmr.msra.gmra.mrb[14].mxu1 %vm520_vm3, %v1583_v41 }
 0xc81   : > { %2420 = vmatprep.mubr.msk.f32.mxu1 %vm2962_vm0, %v2963_v1 }
 0xd4b   : > { %v1572_v42 = vpop.f32.mrb[12].mxu1 }
 0xd4c   : > { %v2394_v43 = vpop.f32.mrb[13].mxu1 }
 0xd53   : > { %v1660_v44 = vpop.f32.mrb[14].mxu1 }
 0xd54   : > { %v2401_v45 = vpop.f32.mrb[15].mxu1  ;;  %v1664_v46 = vsel %vm600_vm5, %v1660_v44, -inf }
 0xd55   : > { %1665 = vmax.xlane.f32.xlu0 %v1664_v46 }
 0xd6b   : > { %2684 = vrot.lane.b32.xlu0 %v3316_v25, %s2976_s29 }
 0xd6f   : > { %2689 = vrot.lane.b32.xlu0 %v3316_v25, %s2977_s19 }
 0xd73   : > { %1760 = vrot.lane.b32.xlu0 %v3322_v27, %s2977_s19 }
 0xde2   : > { %v1666_v47 = vpop.xlane.xlu0 %1665 }
 0xde3   : > { %v1667_v48 = vsub.f32 %v1660_v44, %v1666_v47 }
 0xde5   : > { %v1668_v49 = vmul.f32 1.442695, %v1667_v48 }
 0xde6   : > { %v2685_v50 = vpop.permute.xlu0 %2684 }
 0xde7   : > { %2722 = vpow2.f32 %v1668_v49  ;;  %v2687_v51 = vunpack.i.h.bf16 %v2685_v50  ;;  %v2686_v52 = vunpack.i.l.bf16 %v2685_v50 }
 0xde9   : > { %v2499_v53 = vpack.c.bf16 %v2687_v51, %v2686_v52 }
 0xdea   : > { %v2690_v58 = vpop.permute.xlu0 %2689 }
 0xdeb   : > { %2500 = vmatpush3.bf16.msra.mxu0 %v2499_v53  ;;  %v2692_v59 = vunpack.i.h.bf16 %v2690_v58  ;;  %v2691_v27 = vunpack.i.l.bf16 %v2690_v58 }
 0xdec   : > { %2501 = vmatprep.subr.bf16.mxu0 %v2961_v0 }
 0xded   : > { %v2502_v62 = vpack.c.bf16 %v2692_v59, %v2691_v27 }
 0xdee   : > { %v1761_v63 = vpop.permute.xlu0 %1760 }
 0xdf1   : > { %v2723_v54 = vpop.eup %2722 }
 0xdf2   : > { %v1670_v56 = vsel %vm600_vm5, %v2723_v54, 0.0 }
 0xdf3   : > { %1671 = vadd.xlane.f32.xlu1 %v1670_v56 }
 0xe80   : > { %v1672_v57 = vpop.xlane.xlu1 %1671 }
 0xe81   : > { %2724 = vrcp.f32 %v1672_v57 }
 0xe8b   : > { %v2725_v60 = vpop.eup %2724 }
 0xe8c   : > { %v1674_v61 = vmul.f32 %v2725_v60, %v2723_v54 }
 0xe8e   : > { %2407 = vmatmul.mubr.msk.f32.vlgmr.msra.gmra.mrb[14].mxu0 %vm600_vm5, %v1674_v61 }
 0xe8f   : > { %2504 = vmatpush3.bf16.xpose.msk.msra.mxu0 %vm3312_vm4, %v2502_v62  ;;  %2413 = vmatprep.mubr.msk.f32.mxu0 %vm2962_vm0, %v2963_v1 }
 0xe96   : > { %2414 = vmatmul.mubr.msk.f32.vlgmr.msra.gmra.mrb[16].mxu0 %vm520_vm3, %v1761_v63 }
 0xf61   : > { %v1750_v2 = vpop.f32.mrb[14].mxu0 }
 0xf62   : > { %v2408_v3 = vpop.f32.mrb[15].mxu0 }
 0xf69   : > { %v1838_v4 = vpop.f32.mrb[16].mxu0 }
 0xf6a   : > { %v2415_v5 = vpop.f32.mrb[17].mxu0  ;;  %v1842_v6 = vsel %vm600_vm5, %v1838_v4, -inf }
 0xf6b   : > { %1843 = vmax.xlane.f32.xlu0 %v1842_v6 }
 0xf81   : > { %1221 = vrot.lane.b32.xlu0 %v3394_v55, %s2978_s20  ;;  %s3464_s20 = scalar_lea.hbm %s3515_s6, %s2215_s10 }
 0xff8   : > { %v1844_v7 = vpop.xlane.xlu0 %1843 }
 0xff9   : > { %v1845_v9 = vsub.f32 %v1838_v4, %v1844_v7 }
 0xffb   : > { %v1846_v24 = vmul.f32 1.442695, %v1845_v9 }
 0xffc   : > { %v1222_v17 = vpop.permute.xlu0 %1221 }
 0xffd   : > { %2726 = vpow2.f32 %v1846_v24 }
0x1007   : > { %v2727_v10 = vpop.eup %2726 }
0x1008   : > { %v1848_v11 = vsel %vm600_vm5, %v2727_v10, 0.0 }
0x1009   : > { %1849 = vadd.xlane.f32.xlu1 %v1848_v11 }
0x101a   : > { %2694 = vrot.lane.b32.xlu1 %v3316_v25, %s2979_s27  ;;  %s2025_s27 = scalar_lea.sflag [#allocation5], %s3266_s16 }
0x101e   : > { %865 = vrot.lane.b32.xlu1 %v3358_v8, %s2980_s8  ;;  %s2878_s8 = sshll.u32 %s2986_s26, 4  ;;  %s2879_s8 = int_to_ptr.vmem [resolvable:$false] %s2878_s8 }
0x101f   : > { %p2881_p8 = scmp.lt.s32.totalorder %s3466_s0, %s2879_s8 }
0x1022   : > { %1043 = vrot.lane.b32.xlu1 %v3379_v37, %s2981_s13  ;;  %s2880_s13 = scalar_lea.vmem %s2879_s8, 256 }
0x1023   : > { %p2882_p6 = scmp.lt.s32.totalorder %s2880_s13, %s2874_s25 }
0x1025   : > { %p2883_p10 = por %p2882_p6, %p2881_p8 }
0x1026   : > { %1399 = vrot.lane.b32.xlu1 %v3415_v20, %s2982_s30 }
0x1027   : > { %p2884_p3 = pnand %p2883_p10, %p2877_p0 }
0x102a   : > { %1577 = vrot.lane.b32.xlu1 %v1572_v42, %s2983_s7 }
0x102e   : > { %1755 = vrot.lane.b32.xlu1 %v1750_v2, %s2984_s12 }
0x1096   : > { %v1850_v55 = vpop.xlane.xlu1 %1849 }
0x1097   : > { %2728 = vrcp.f32 %v1850_v55 }
0x109a   : > { %v2695_v12 = vpop.permute.xlu1 %2694 }
0x109b   : > { %v2697_v13 = vunpack.i.h.bf16 %v2695_v12  ;;  %v2696_v14 = vunpack.i.l.bf16 %v2695_v12 }
0x109d   : > { %v2506_v25 = vpack.c.bf16 %v2697_v13, %v2696_v14 }
0x109e   : > { %v866_v15 = vpop.permute.xlu1 %865 }
0x109f   : > { %869 = vst.msk [vmem:[#allocation2] sm:$0xff] %vm868_vm6, %v866_v15  ;;  %2507 = vmatpush3.bf16.msra.mxu1 %v2506_v25 }
0x10a0   : > { %2508 = vmatprep.subr.bf16.mxu1 %v2961_v0 }
0x10a1   : > { %v2729_v8 = vpop.eup %2728 }
0x10a2   : > { %v1852_v37 = vmul.f32 %v2729_v8, %v2727_v10  ;;  %v1044_v16 = vpop.permute.xlu1 %1043 }
0x10a3   : > { %1047 = vst.msk [vmem:[#allocation2] sm:$0xff] %vm1046_vm7, %v1044_v16 }
0x10a4   : > { %2421 = vmatmul.mubr.msk.f32.vlgmr.msra.gmra.mrb[16].mxu1 %vm600_vm5, %v1852_v37  ;;  %1225 = vst.msk [vmem:[#allocation2] sm:$0xff] %vm1224_vm8, %v1222_v17 }
0x10a5   : > { %2431 = vmatprep.mubr.msk.f32.mxu1 %vm2962_vm0, %v2963_v1  ;;  %2510 = vmatpush3.bf16.msra.mxu1 %v2509_v23 }
0x10a6   : > { %v1400_v18 = vpop.permute.xlu1 %1399  ;;  %2511 = vmatprep.subr.bf16.mxu1 %v2961_v0 }
0x10a7   : > { %1403 = vst.msk [vmem:[#allocation2] sm:$0xff] %vm1402_vm9, %v1400_v18 }
0x10a9   : > { %2513 = vmatpush3.bf16.msra.mxu1 %v2512_v29 }
0x10aa   : > { %v1578_v19 = vpop.permute.xlu1 %1577 }
0x10ab   : > { %1581 = vst.msk [vmem:[#allocation2] sm:$0xff] %vm1580_vm10, %v1578_v19 }
0x10ae   : > { %v1756_v20 = vpop.permute.xlu1 %1755 }
0x10af   : > { %1759 = vst.msk [vmem:[#allocation2] sm:$0xff] %vm1758_vm11, %v1756_v20 }
0x1177   : > { %v1928_v1 = vpop.f32.mrb[16].mxu1 }
0x1178   : > { %1933 = vrot.lane.b32.xlu1 %v1928_v1, %s2985_s9  ;;  %v2422_v30 = vpop.f32.mrb[17].mxu1 }
0x11ea   : > { %v1934_v31 = vpop.permute.xlu1 %1933 }
0x11eb   : > { %1937 = vst.msk [vmem:[#allocation2] sm:$0xff] %vm1936_vm12, %v1934_v31 }
0x11f2   : > { %v1938_v32 = vld [vmem:[#allocation2] sm:$0xff] }
0x11f3   : > { %2432 = vmatmul.mubr.msk.f32.vlgmr.msra.gmra.mrb[18].mxu1 %vm357_vm2, %v1938_v32 }
0x12c6   : > { %v2019_v0 = vpop.f32.mrb[18].mxu1 }
0x12c7   : > { %v2020_v34 = vadd.f32 %v2212_v33, %v2019_v0  ;;  %v2433_v35 = vpop.f32.mrb[19].mxu1 }
0x12c9   : > { %2023 = vst.msk [vmem:[%s349_s11] sm:$0xff] %vm357_vm2, %v2020_v34 }
0x12ca   : > { %2887 = shalt.err (!%p2884_p3)
}
0x12cb   : > { %s2888_s16 = scalar_lea.hbm %s3464_s20, 128  ;;  %s2892_s12 = scalar_lea.hbm %s3515_s6, 256 }
0x12cc   : > { %p2889_p9 = scmp.ne.s32.totalorder %s3464_s20, %s2888_s16  ;;  %p2893_p7 = scmp.lt.u32.totalorder %s3464_s20, %s3515_s6 }
0x12cd   : > { %p2894_p12 = scmp.lt.u32.totalorder %s2892_s12, %s2888_s16  ;;  %p2896_p2 = scmp.lt.u32.totalorder %s2888_s16, %s3464_s20 }
0x12ce   : > { %p2890_p13 = pnand %p2889_p9, %p3176_p5 }
0x12cf   : > { %p2895_p1 = por %p2894_p12, %p2893_p7 }
0x12d0   : > { %p2891_p11 = pneg %p2890_p13 }
0x12d1   : > { %p2897_p4 = por %p2896_p2, %p2895_p1 }
0x12d3   : > { %p2898_p0 = pnand %p2897_p4, %p2891_p11 }
0x12d5   : > { %2901 = shalt.err (!%p2898_p0)
}
0x12d6   : > { %2530 = dma.vmem_to_hbm [thread:$0]  (%p3176_p5), %s3466_s0, 128, %s3464_s20, %s2025_s27  }
0x12d7 PF: > { %s2050_s17 = sand.u32 1, %s2940_s21   ;;  %p3543_p8 = scmp.ne.s32.totalorder %s3524_s28, 0 }
0x12d8   : > { %p3544_p6 = scmp.ge.s32.totalorder %s2952_s24, 2  ;;  %s2051_s10 = scalar_lea.sflag [#allocation5], %s2050_s17 }
0x12da   : > { %p2550_p10 = pnand %p3544_p6, %p3543_p8 }
0x12dc   : > { %2935 = dma.done.wait (!%p2550_p10), %s2051_s10, 128  }
0x12dd   : > { %2937 = vsyncadd (!%p2550_p10), %s2051_s10, 4294967168  ;;  %p23_p3 = scmp.ge.s32.totalorder %s3162_s18, 4   ;;  %s3545_s21 = smov %s2944_s22 }
0x12de   : > { %s3546_s22 = smov %s2948_s23  ;;  %s3547_s23 = smov %s3172_s14 }
0x12df   : > { %s3548_s24 = smov %s3162_s18  ;;  %25 = sbr.rel (!%p23_p3) target bundleno = 11 (0xb), region = 114 }
0x12e6   :  { %2056 = vsyncpa [#allocation4], 1 }
0x12e7   :  { %2058 = vsyncpa [#allocation4 + $0x1], 1 }
0x12e8   :  { %2059 = vsyncpa [#allocation7], 1 }
0x12e9   :  { %2061 = vsyncpa [#allocation7 + $0x1], 1 }
0x12ea   :  { %2062 = vsyncpa [#allocation10], 1 }
0x12eb   :  { %2063 = vsyncpa [#allocation5], 1 }
0x12ec   :  { %2065 = vsyncpa [#allocation5 + $0x1], 1 }

</bundles_post_ra>
